<compile_context>
chip_gen: v5e
topology: v5e:2x2
jax: 0.10.0
libtpu: 0.0.40
codegen_flags: <defaults>
</compile_context>

<pallas_src>
import jax
import jax.numpy as jnp
from jax.experimental import pallas as pl
from jax.experimental.pallas import tpu as pltpu


def _vmem_spec():
    return pl.BlockSpec(memory_space=pltpu.MemorySpace.VMEM)


# ------------------------------ fused kernel --------------------------------

def _pinsage_fwd_kernel(
    feat_ref,      # (n_src, feat_dim)  float features of block-0 src nodes
    emb_ref,       # (n_src, H)         gathered id-embedding rows
    wfeat_ref,     # (feat_dim, H)      LinearProjector weight
    hbias_ref,     # (5, H)             [b_feat, qb0, wb0, qb1, wb1]
    a0_ref,        # (n_dst0, n_src)    block-0 dense weighted adjacency A[dst, src]
    a1_ref,        # (n_seed, n_dst0)   block-1 dense weighted adjacency
    qw_ref,        # (2, H, H)          per-layer Q weights
    wn_ref,        # (2, H, H)          per-layer W[:H]  (neighbour half)
    wd_ref,        # (2, H, H)          per-layer W[H:]  (self half)
    eidx_ref,      # (3|4, E_pad) i32   [pos_src, pos_dst, (neg_src,) neg_dst]
    ebias_ref,     # (2, E_pad)         [b[pos_src]+b[pos_dst], b[neg_src]+b[neg_dst]]
    loss_ref,      # out (1, E_pad)     hinge loss per edge (pad slots sliced off later)
):
    n_seed = a1_ref.shape[0]
    e_pad = loss_ref.shape[1]

    b_feat = hbias_ref[0:1, :]
    qb = (hbias_ref[1:2, :], hbias_ref[3:4, :])
    wb = (hbias_ref[2:3, :], hbias_ref[4:5, :])

    # ---- LinearProjector: Linear(float feat) + Embedding(id), summed ----
    h_item = (jnp.dot(feat_ref[...], wfeat_ref[...],
                      preferred_element_type=jnp.float32)
              + b_feat + emb_ref[...])
    # blocks[-1].dstdata rows are a prefix of blocks[0].srcdata rows, so the
    # second projector call in get_repr() is just this prefix view.
    h_item_dst = h_item[:n_seed]

    # ---- WeightedSAGEConv (x2) ----
    # TODO(synk): nn.Dropout(0.5) is stochastic; treated as identity (eval mode).
    def conv(h_src, adj, li):
        h_dst = h_src[:adj.shape[0]]
        n_src = jnp.maximum(
            jnp.dot(h_src, qw_ref[li], preferred_element_type=jnp.float32)
            + qb[li], 0.0)
        n = jnp.dot(adj, n_src, preferred_element_type=jnp.float32)   # sum_e w * n_src
        ws = jnp.maximum(jnp.sum(adj, axis=1, keepdims=True), 1.0)    # clamp(min=1)
        n = n * pl.reciprocal(ws, approx=True)                        # EUP, not VPU divide
        # W([n/ws, h_dst]) as two accumulated K=H matmuls (no lane-concat copy).
        z = (jnp.dot(n, wn_ref[li], preferred_element_type=jnp.float32)
             + jnp.dot(h_dst, wd_ref[li], preferred_element_type=jnp.float32)
             + wb[li])
        return jnp.maximum(z, 0.0)

    h = conv(h_item, a0_ref[...], 0)
    h = conv(h,      a1_ref[...], 1)

    # ---- get_repr: residual + row-wise L2 normalize ----
    z = h_item_dst + h
    sumsq = jnp.sum(z * z, axis=1, keepdims=True)
    # rsqrt(max(ss, eps)) on EUP; zero rows stay zero (matches where(norm==0,1)).
    z = z * jax.lax.rsqrt(jnp.maximum(sumsq, 1e-12))

    # ---- scorer (pos & neg) + hinge loss, lane-dense (1, E_pad) ----
    # score[e] = z[src_e] . z[dst_e] + bias[src_e] + bias[dst_e]
    # Gather z per edge via in-kernel one-hot matmuls (edges stay on lanes).
    iota = jax.lax.broadcasted_iota(jnp.int32, (n_seed, e_pad), 0)

    def gather_edges(idx_row):          # (1, E_pad) idx -> (H, E_pad) gathered z^T
        sel = (iota == idx_row).astype(jnp.float32)
        return jax.lax.dot_general(z, sel, (((0,), (0,)), ((), ())),
                                   preferred_element_type=jnp.float32)

    zu_p = gather_edges(eidx_ref[0:1, :])
    zv_p = gather_edges(eidx_ref[1:2, :])
    if eidx_ref.shape[0] == 3:          # dedup: neg_src == pos_src (DGL sampler)
        zu_n = zu_p
        zv_n = gather_edges(eidx_ref[2:3, :])
    else:
        zu_n = gather_edges(eidx_ref[2:3, :])
        zv_n = gather_edges(eidx_ref[3:4, :])

    pos = jnp.sum(zu_p * zv_p, axis=0, keepdims=True) + ebias_ref[0:1, :]
    neg = jnp.sum(zu_n * zv_n, axis=0, keepdims=True) + ebias_ref[1:2, :]
    loss_ref[...] = jnp.maximum(neg - pos + 1.0, 0.0)


# -------------------------------- wrapper ------------------------------------

def pinsage_forward(feat_src, ids_src, emb_table, w_feat, b_feat,
                    conv_params, adjs, node_bias, seed_nids,
                    pos_src, pos_dst, neg_src, neg_dst,
                    *, neg_src_is_pos_src=True):
    """Full PinSAGEModel.forward.  Returns the (n_edges,) hinge loss."""
    n_edges = pos_src.shape[0]
    e_pad = max(128, ((n_edges + 127) // 128) * 128)   # lane-dense loss / selectors

    (qw0, qb0, w0, wb0), (qw1, qb1, w1, wb1) = conv_params
    hidden = qw0.shape[0]
    a0, a1 = adjs

    # --- cheap input prep, fused into the same jit as the single kernel ---
    emb_rows = emb_table[ids_src]                                   # embedding gather
    hbias = jnp.concatenate([b_feat, qb0, wb0, qb1, wb1], axis=0)   # (5, H) slab
    qw_stack = jnp.stack([qw0, qw1])                                # (2, H, H)
    wn_stack = jnp.stack([w0[:hidden], w1[:hidden]])                # (2, H, H)
    wd_stack = jnp.stack([w0[hidden:], w1[hidden:]])                # (2, H, H)

    def pad_e(x, fill):
        return jnp.concatenate([x, jnp.full((e_pad - n_edges,), fill, x.dtype)])

    idx_rows = ([pos_src, pos_dst, neg_dst] if neg_src_is_pos_src
                else [pos_src, pos_dst, neg_src, neg_dst])
    eidx = jnp.stack([pad_e(r.astype(jnp.int32), -1) for r in idx_rows])

    seed_bias = node_bias[seed_nids]                                # bias of seed items
    ebias = jnp.stack([pad_e(seed_bias[pos_src] + seed_bias[pos_dst], 0.0),
                       pad_e(seed_bias[neg_src] + seed_bias[neg_dst], 0.0)])

    args = (feat_src, emb_rows, w_feat, hbias, a0, a1,
            qw_stack, wn_stack, wd_stack, eidx, ebias)

    loss_row = pl.pallas_call(
        _pinsage_fwd_kernel,
        out_shape=jax.ShapeDtypeStruct((1, e_pad), jnp.float32),
        in_specs=[_vmem_spec()] * len(args),
        out_specs=_vmem_spec(),
    )(*args)
    return loss_row[0, :n_edges]


# ------------------------------ parameters -----------------------------------

def xavier(key, shape, gain=1.0):
    fan_in, fan_out = shape
    bound = gain * (6.0 / (fan_in + fan_out)) ** 0.5
    return jax.random.uniform(key, shape, jnp.float32, -bound, bound)


# --------------------------------- main ---------------------------------------

if __name__ == "__main__":
    hidden, feat_dim, n_layers = 32, 16, 2
    n_src0, n_dst0, n_dst1 = 24, 16, 8       # block node counts (dst prefix of src)
    n_nodes, vocab, n_edges = 100, 50, 8     # graph nodes, embedding vocab, pair edges

    key = jax.random.PRNGKey(0)
    keys = jax.random.split(key, 20)

    # ---- synthetic block / graph data ----
    feat_src0 = jax.random.normal(keys[0], (n_src0, feat_dim), jnp.float32)
    ids_src0 = jax.random.randint(keys[1], (n_src0,), 0, vocab - 1)

    def rand_adj(k, nd, ns):
        k1, k2 = jax.random.split(k)
        w = jax.random.uniform(k1, (nd, ns), jnp.float32, 0.1, 1.0)
        mask = (jax.random.uniform(k2, (nd, ns)) < 0.4).astype(jnp.float32)
        return w * mask

    A0 = rand_adj(keys[2], n_dst0, n_src0)   # block 0: A[dst, src] * edge weight
    A1 = rand_adj(keys[3], n_dst1, n_dst0)   # block 1

    pos_src = jax.random.randint(keys[4], (n_edges,), 0, n_dst1)
    pos_dst = jax.random.randint(keys[5], (n_edges,), 0, n_dst1)
    neg_src = pos_src                        # DGL's negative sampler reuses pos src nodes
    neg_dst = jax.random.randint(keys[6], (n_edges,), 0, n_dst1)
    seed_nids = jax.random.randint(keys[7], (n_dst1,), 0, n_nodes)  # dgl.NID of seeds

    # ---- parameters (deterministic init, matching module __init__ shapes) ----
    gain = 2.0 ** 0.5  # calculate_gain('relu')
    w_feat = xavier(keys[8], (feat_dim, hidden))
    b_feat = jnp.zeros((1, hidden), jnp.float32)
    emb = xavier(keys[9], (vocab, hidden))
    emb = emb.at[-1].set(0.0)                # padding_idx = -1
    convs = []
    for li in range(n_layers):
        kq, kw = jax.random.split(keys[10 + li])
        qw = xavier(kq, (hidden, hidden), gain)
        qb = jnp.zeros((1, hidden), jnp.float32)
        wfull = xavier(kw, (2 * hidden, hidden), gain)   # W: (hidden + input, output)
        wb = jnp.zeros((1, hidden), jnp.float32)
        convs.append((qw, qb, wfull, wb))
    node_bias = jnp.zeros((n_nodes,), jnp.float32)       # nn.Parameter(torch.zeros(n))

    # ---- fused forward: (neg_score - pos_score + 1).clamp(min=0) ----
    fwd = jax.jit(pinsage_forward)
    out = fwd(feat_src0, ids_src0, emb, w_feat, b_feat,
              tuple(convs), (A0, A1), node_bias, seed_nids,
              pos_src, pos_dst, neg_src, neg_dst)

    out = jax.block_until_ready(out)
    assert out.shape == (n_edges,) and bool(jnp.all(jnp.isfinite(out)))
    print("KERNEL_OK")
</pallas_src>

<mosaic_0001>
module attributes {stable_mosaic.version = 11 : i64} {
  func.func @_pinsage_fwd_kernel(%arg0: memref<24x16xf32, #tpu.memory_space<vmem>>, %arg1: memref<24x32xf32, #tpu.memory_space<vmem>>, %arg2: memref<16x32xf32, #tpu.memory_space<vmem>>, %arg3: memref<5x32xf32, #tpu.memory_space<vmem>>, %arg4: memref<16x24xf32, #tpu.memory_space<vmem>>, %arg5: memref<8x16xf32, #tpu.memory_space<vmem>>, %arg6: memref<2x32x32xf32, #tpu.memory_space<vmem>>, %arg7: memref<2x32x32xf32, #tpu.memory_space<vmem>>, %arg8: memref<2x32x32xf32, #tpu.memory_space<vmem>>, %arg9: memref<3x128xi32, #tpu.memory_space<vmem>>, %arg10: memref<2x128xf32, #tpu.memory_space<vmem>>, %arg11: memref<1x128xf32, #tpu.memory_space<vmem>>) attributes {dimension_semantics = [], scalar_prefetch = 0 : i64, scratch_operands = 0 : i64, tpu.core_type = #tpu.core_type<tc>} {
    %c0 = arith.constant 0 : index
    %c0_0 = arith.constant 0 : index
    %0 = vector.load %arg3[%c0, %c0_0] : memref<5x32xf32, #tpu.memory_space<vmem>>, vector<1x32xf32>
    %c1 = arith.constant 1 : index
    %c0_1 = arith.constant 0 : index
    %1 = vector.load %arg3[%c1, %c0_1] : memref<5x32xf32, #tpu.memory_space<vmem>>, vector<1x32xf32>
    %c3 = arith.constant 3 : index
    %c0_2 = arith.constant 0 : index
    %2 = vector.load %arg3[%c3, %c0_2] : memref<5x32xf32, #tpu.memory_space<vmem>>, vector<1x32xf32>
    %c2 = arith.constant 2 : index
    %c0_3 = arith.constant 0 : index
    %3 = vector.load %arg3[%c2, %c0_3] : memref<5x32xf32, #tpu.memory_space<vmem>>, vector<1x32xf32>
    %c4 = arith.constant 4 : index
    %c0_4 = arith.constant 0 : index
    %4 = vector.load %arg3[%c4, %c0_4] : memref<5x32xf32, #tpu.memory_space<vmem>>, vector<1x32xf32>
    %c0_5 = arith.constant 0 : index
    %c0_6 = arith.constant 0 : index
    %5 = vector.load %arg0[%c0_5, %c0_6] : memref<24x16xf32, #tpu.memory_space<vmem>>, vector<24x16xf32>
    %c0_7 = arith.constant 0 : index
    %c0_8 = arith.constant 0 : index
    %6 = vector.load %arg2[%c0_7, %c0_8] : memref<16x32xf32, #tpu.memory_space<vmem>>, vector<16x32xf32>
    %cst = arith.constant dense<0.000000e+00> : vector<24x32xf32>
    %7 = tpu.matmul %5, %6, %cst {dimension_numbers = #tpu.dot_dimension_numbers<[1], [0], [0], [1], [0, 0, 1, 1], [], []>} : vector<24x16xf32>, vector<16x32xf32>, vector<24x32xf32> -> vector<24x32xf32>
    %8 = vector.broadcast %0 : vector<1x32xf32> to vector<24x32xf32>
    %9 = arith.addf %7, %8 : vector<24x32xf32>
    %c0_9 = arith.constant 0 : index
    %c0_10 = arith.constant 0 : index
    %10 = vector.load %arg1[%c0_9, %c0_10] : memref<24x32xf32, #tpu.memory_space<vmem>>, vector<24x32xf32>
    %11 = arith.addf %9, %10 : vector<24x32xf32>
    %12 = vector.extract_strided_slice %11 {offsets = [0, 0], sizes = [8, 32], strides = [1, 1]} : vector<24x32xf32> to vector<8x32xf32>
    %c0_11 = arith.constant 0 : index
    %c0_12 = arith.constant 0 : index
    %13 = vector.load %arg4[%c0_11, %c0_12] : memref<16x24xf32, #tpu.memory_space<vmem>>, vector<16x24xf32>
    %14 = vector.extract_strided_slice %11 {offsets = [0, 0], sizes = [16, 32], strides = [1, 1]} : vector<24x32xf32> to vector<16x32xf32>
    %c0_13 = arith.constant 0 : index
    %c0_14 = arith.constant 0 : index
    %c0_15 = arith.constant 0 : index
    %15 = vector.load %arg6[%c0_13, %c0_14, %c0_15] : memref<2x32x32xf32, #tpu.memory_space<vmem>>, vector<1x32x32xf32>
    %16 = vector.shape_cast %15 : vector<1x32x32xf32> to vector<32x32xf32>
    %cst_16 = arith.constant dense<0.000000e+00> : vector<24x32xf32>
    %17 = tpu.matmul %11, %16, %cst_16 {dimension_numbers = #tpu.dot_dimension_numbers<[1], [0], [0], [1], [0, 0, 1, 1], [], []>} : vector<24x32xf32>, vector<32x32xf32>, vector<24x32xf32> -> vector<24x32xf32>
    %18 = vector.broadcast %1 : vector<1x32xf32> to vector<24x32xf32>
    %19 = arith.addf %17, %18 : vector<24x32xf32>
    %cst_17 = arith.constant 0.000000e+00 : f32
    %20 = vector.broadcast %cst_17 : f32 to vector<24x32xf32>
    %21 = arith.maximumf %19, %20 : vector<24x32xf32>
    %cst_18 = arith.constant dense<0.000000e+00> : vector<16x32xf32>
    %22 = tpu.matmul %13, %21, %cst_18 {dimension_numbers = #tpu.dot_dimension_numbers<[1], [0], [0], [1], [0, 0, 1, 1], [], []>} : vector<16x24xf32>, vector<24x32xf32>, vector<16x32xf32> -> vector<16x32xf32>
    %cst_19 = arith.constant dense<0.000000e+00> : vector<16xf32>
    %23 = vector.multi_reduction <add>, %13, %cst_19 [1] : vector<16x24xf32> to vector<16xf32>
    %24 = vector.shape_cast %23 : vector<16xf32> to vector<16x1xf32>
    %cst_20 = arith.constant 1.000000e+00 : f32
    %25 = vector.broadcast %cst_20 : f32 to vector<16x1xf32>
    %26 = arith.maximumf %24, %25 : vector<16x1xf32>
    %27 = tpu.reciprocal %26 {approx = true} : vector<16x1xf32> -> vector<16x1xf32>
    %28 = vector.broadcast %27 : vector<16x1xf32> to vector<16x32xf32>
    %29 = arith.mulf %22, %28 : vector<16x32xf32>
    %c0_21 = arith.constant 0 : index
    %c0_22 = arith.constant 0 : index
    %c0_23 = arith.constant 0 : index
    %30 = vector.load %arg7[%c0_21, %c0_22, %c0_23] : memref<2x32x32xf32, #tpu.memory_space<vmem>>, vector<1x32x32xf32>
    %31 = vector.shape_cast %30 : vector<1x32x32xf32> to vector<32x32xf32>
    %cst_24 = arith.constant dense<0.000000e+00> : vector<16x32xf32>
    %32 = tpu.matmul %29, %31, %cst_24 {dimension_numbers = #tpu.dot_dimension_numbers<[1], [0], [0], [1], [0, 0, 1, 1], [], []>} : vector<16x32xf32>, vector<32x32xf32>, vector<16x32xf32> -> vector<16x32xf32>
    %c0_25 = arith.constant 0 : index
    %c0_26 = arith.constant 0 : index
    %c0_27 = arith.constant 0 : index
    %33 = vector.load %arg8[%c0_25, %c0_26, %c0_27] : memref<2x32x32xf32, #tpu.memory_space<vmem>>, vector<1x32x32xf32>
    %34 = vector.shape_cast %33 : vector<1x32x32xf32> to vector<32x32xf32>
    %cst_28 = arith.constant dense<0.000000e+00> : vector<16x32xf32>
    %35 = tpu.matmul %14, %34, %cst_28 {dimension_numbers = #tpu.dot_dimension_numbers<[1], [0], [0], [1], [0, 0, 1, 1], [], []>} : vector<16x32xf32>, vector<32x32xf32>, vector<16x32xf32> -> vector<16x32xf32>
    %36 = arith.addf %32, %35 : vector<16x32xf32>
    %37 = vector.broadcast %3 : vector<1x32xf32> to vector<16x32xf32>
    %38 = arith.addf %36, %37 : vector<16x32xf32>
    %cst_29 = arith.constant 0.000000e+00 : f32
    %39 = vector.broadcast %cst_29 : f32 to vector<16x32xf32>
    %40 = arith.maximumf %38, %39 : vector<16x32xf32>
    %c0_30 = arith.constant 0 : index
    %c0_31 = arith.constant 0 : index
    %41 = vector.load %arg5[%c0_30, %c0_31] : memref<8x16xf32, #tpu.memory_space<vmem>>, vector<8x16xf32>
    %42 = vector.extract_strided_slice %40 {offsets = [0, 0], sizes = [8, 32], strides = [1, 1]} : vector<16x32xf32> to vector<8x32xf32>
    %c1_32 = arith.constant 1 : index
    %c0_33 = arith.constant 0 : index
    %c0_34 = arith.constant 0 : index
    %43 = vector.load %arg6[%c1_32, %c0_33, %c0_34] : memref<2x32x32xf32, #tpu.memory_space<vmem>>, vector<1x32x32xf32>
    %44 = vector.shape_cast %43 : vector<1x32x32xf32> to vector<32x32xf32>
    %cst_35 = arith.constant dense<0.000000e+00> : vector<16x32xf32>
    %45 = tpu.matmul %40, %44, %cst_35 {dimension_numbers = #tpu.dot_dimension_numbers<[1], [0], [0], [1], [0, 0, 1, 1], [], []>} : vector<16x32xf32>, vector<32x32xf32>, vector<16x32xf32> -> vector<16x32xf32>
    %46 = vector.broadcast %2 : vector<1x32xf32> to vector<16x32xf32>
    %47 = arith.addf %45, %46 : vector<16x32xf32>
    %cst_36 = arith.constant 0.000000e+00 : f32
    %48 = vector.broadcast %cst_36 : f32 to vector<16x32xf32>
    %49 = arith.maximumf %47, %48 : vector<16x32xf32>
    %cst_37 = arith.constant dense<0.000000e+00> : vector<8x32xf32>
    %50 = tpu.matmul %41, %49, %cst_37 {dimension_numbers = #tpu.dot_dimension_numbers<[1], [0], [0], [1], [0, 0, 1, 1], [], []>} : vector<8x16xf32>, vector<16x32xf32>, vector<8x32xf32> -> vector<8x32xf32>
    %cst_38 = arith.constant dense<0.000000e+00> : vector<8xf32>
    %51 = vector.multi_reduction <add>, %41, %cst_38 [1] : vector<8x16xf32> to vector<8xf32>
    %52 = vector.shape_cast %51 : vector<8xf32> to vector<8x1xf32>
    %cst_39 = arith.constant 1.000000e+00 : f32
    %53 = vector.broadcast %cst_39 : f32 to vector<8x1xf32>
    %54 = arith.maximumf %52, %53 : vector<8x1xf32>
    %55 = tpu.reciprocal %54 {approx = true} : vector<8x1xf32> -> vector<8x1xf32>
    %56 = vector.broadcast %55 : vector<8x1xf32> to vector<8x32xf32>
    %57 = arith.mulf %50, %56 : vector<8x32xf32>
    %c1_40 = arith.constant 1 : index
    %c0_41 = arith.constant 0 : index
    %c0_42 = arith.constant 0 : index
    %58 = vector.load %arg7[%c1_40, %c0_41, %c0_42] : memref<2x32x32xf32, #tpu.memory_space<vmem>>, vector<1x32x32xf32>
    %59 = vector.shape_cast %58 : vector<1x32x32xf32> to vector<32x32xf32>
    %cst_43 = arith.constant dense<0.000000e+00> : vector<8x32xf32>
    %60 = tpu.matmul %57, %59, %cst_43 {dimension_numbers = #tpu.dot_dimension_numbers<[1], [0], [0], [1], [0, 0, 1, 1], [], []>} : vector<8x32xf32>, vector<32x32xf32>, vector<8x32xf32> -> vector<8x32xf32>
    %c1_44 = arith.constant 1 : index
    %c0_45 = arith.constant 0 : index
    %c0_46 = arith.constant 0 : index
    %61 = vector.load %arg8[%c1_44, %c0_45, %c0_46] : memref<2x32x32xf32, #tpu.memory_space<vmem>>, vector<1x32x32xf32>
    %62 = vector.shape_cast %61 : vector<1x32x32xf32> to vector<32x32xf32>
    %cst_47 = arith.constant dense<0.000000e+00> : vector<8x32xf32>
    %63 = tpu.matmul %42, %62, %cst_47 {dimension_numbers = #tpu.dot_dimension_numbers<[1], [0], [0], [1], [0, 0, 1, 1], [], []>} : vector<8x32xf32>, vector<32x32xf32>, vector<8x32xf32> -> vector<8x32xf32>
    %64 = arith.addf %60, %63 : vector<8x32xf32>
    %65 = vector.broadcast %4 : vector<1x32xf32> to vector<8x32xf32>
    %66 = arith.addf %64, %65 : vector<8x32xf32>
    %cst_48 = arith.constant 0.000000e+00 : f32
    %67 = vector.broadcast %cst_48 : f32 to vector<8x32xf32>
    %68 = arith.maximumf %66, %67 : vector<8x32xf32>
    %69 = arith.addf %12, %68 : vector<8x32xf32>
    %70 = arith.mulf %69, %69 : vector<8x32xf32>
    %cst_49 = arith.constant dense<0.000000e+00> : vector<8xf32>
    %71 = vector.multi_reduction <add>, %70, %cst_49 [1] : vector<8x32xf32> to vector<8xf32>
    %72 = vector.shape_cast %71 : vector<8xf32> to vector<8x1xf32>
    %cst_50 = arith.constant 9.99999996E-13 : f32
    %73 = vector.broadcast %cst_50 : f32 to vector<8x1xf32>
    %74 = arith.maximumf %72, %73 : vector<8x1xf32>
    %75 = math.rsqrt %74 : vector<8x1xf32>
    %76 = vector.broadcast %75 : vector<8x1xf32> to vector<8x32xf32>
    %77 = arith.mulf %69, %76 : vector<8x32xf32>
    %78 = tpu.iota {dimensions = array<i32: 0>} : vector<8x128xi32>
    %c0_51 = arith.constant 0 : index
    %c0_52 = arith.constant 0 : index
    %79 = vector.load %arg9[%c0_51, %c0_52] : memref<3x128xi32, #tpu.memory_space<vmem>>, vector<1x128xi32>
    %80 = vector.broadcast %79 : vector<1x128xi32> to vector<8x128xi32>
    %81 = arith.cmpi eq, %78, %80 : vector<8x128xi32>
    %82 = arith.extui %81 : vector<8x128xi1> to vector<8x128xi32>
    %83 = arith.sitofp %82 : vector<8x128xi32> to vector<8x128xf32>
    %cst_53 = arith.constant dense<0.000000e+00> : vector<32x128xf32>
    %84 = tpu.matmul %77, %83, %cst_53 {dimension_numbers = #tpu.dot_dimension_numbers<[0], [0], [1], [1], [0, 1, 1, 1], [], []>} : vector<8x32xf32>, vector<8x128xf32>, vector<32x128xf32> -> vector<32x128xf32>
    %c1_54 = arith.constant 1 : index
    %c0_55 = arith.constant 0 : index
    %85 = vector.load %arg9[%c1_54, %c0_55] : memref<3x128xi32, #tpu.memory_space<vmem>>, vector<1x128xi32>
    %86 = vector.broadcast %85 : vector<1x128xi32> to vector<8x128xi32>
    %87 = arith.cmpi eq, %78, %86 : vector<8x128xi32>
    %88 = arith.extui %87 : vector<8x128xi1> to vector<8x128xi32>
    %89 = arith.sitofp %88 : vector<8x128xi32> to vector<8x128xf32>
    %cst_56 = arith.constant dense<0.000000e+00> : vector<32x128xf32>
    %90 = tpu.matmul %77, %89, %cst_56 {dimension_numbers = #tpu.dot_dimension_numbers<[0], [0], [1], [1], [0, 1, 1, 1], [], []>} : vector<8x32xf32>, vector<8x128xf32>, vector<32x128xf32> -> vector<32x128xf32>
    %c2_57 = arith.constant 2 : index
    %c0_58 = arith.constant 0 : index
    %91 = vector.load %arg9[%c2_57, %c0_58] : memref<3x128xi32, #tpu.memory_space<vmem>>, vector<1x128xi32>
    %92 = vector.broadcast %91 : vector<1x128xi32> to vector<8x128xi32>
    %93 = arith.cmpi eq, %78, %92 : vector<8x128xi32>
    %94 = arith.extui %93 : vector<8x128xi1> to vector<8x128xi32>
    %95 = arith.sitofp %94 : vector<8x128xi32> to vector<8x128xf32>
    %cst_59 = arith.constant dense<0.000000e+00> : vector<32x128xf32>
    %96 = tpu.matmul %77, %95, %cst_59 {dimension_numbers = #tpu.dot_dimension_numbers<[0], [0], [1], [1], [0, 1, 1, 1], [], []>} : vector<8x32xf32>, vector<8x128xf32>, vector<32x128xf32> -> vector<32x128xf32>
    %97 = arith.mulf %84, %90 : vector<32x128xf32>
    %cst_60 = arith.constant dense<0.000000e+00> : vector<128xf32>
    %98 = vector.multi_reduction <add>, %97, %cst_60 [0] : vector<32x128xf32> to vector<128xf32>
    %99 = vector.shape_cast %98 : vector<128xf32> to vector<1x128xf32>
    %c0_61 = arith.constant 0 : index
    %c0_62 = arith.constant 0 : index
    %100 = vector.load %arg10[%c0_61, %c0_62] : memref<2x128xf32, #tpu.memory_space<vmem>>, vector<1x128xf32>
    %101 = arith.addf %99, %100 : vector<1x128xf32>
    %102 = arith.mulf %84, %96 : vector<32x128xf32>
    %cst_63 = arith.constant dense<0.000000e+00> : vector<128xf32>
    %103 = vector.multi_reduction <add>, %102, %cst_63 [0] : vector<32x128xf32> to vector<128xf32>
    %104 = vector.shape_cast %103 : vector<128xf32> to vector<1x128xf32>
    %c1_64 = arith.constant 1 : index
    %c0_65 = arith.constant 0 : index
    %105 = vector.load %arg10[%c1_64, %c0_65] : memref<2x128xf32, #tpu.memory_space<vmem>>, vector<1x128xf32>
    %106 = arith.addf %104, %105 : vector<1x128xf32>
    %107 = arith.subf %106, %101 : vector<1x128xf32>
    %cst_66 = arith.constant 1.000000e+00 : f32
    %108 = vector.broadcast %cst_66 : f32 to vector<1x128xf32>
    %109 = arith.addf %107, %108 : vector<1x128xf32>
    %cst_67 = arith.constant 0.000000e+00 : f32
    %110 = vector.broadcast %cst_67 : f32 to vector<1x128xf32>
    %111 = arith.maximumf %109, %110 : vector<1x128xf32>
    %c0_68 = arith.constant 0 : index
    %c0_69 = arith.constant 0 : index
    %112 = vector.load %arg11[%c0_68, %c0_69] : memref<1x128xf32, #tpu.memory_space<vmem>>, vector<1x128xf32>
    tpu.vector_store %arg11[%c0_68, %c0_69], %111 {strides = array<i32>} : memref<1x128xf32, #tpu.memory_space<vmem>>, vector<1x128xf32>,
    return
  }
}

</mosaic_0001>

<bundles_post_ra>
// kernel: pinsage_forward.1
= control target key start
LH: loop header
LB: loop body
LE: loop exit
PB: predicated region body
PF: predicated region fallthrough
CT: control target
= control target key end

     0   :  { %vm49_vm0 = vcmask 130048   ;;  %vm98_vm1 = vcmask 261120   ;;  %vm137_vm2 = vcmask 195584   ;;  %vm423_vm9 = vcmask 64512   ;;  %s884_s2 = inlined_call_operand.vmem [shape: f32[16,32], index: 2, kind: input, shape index: {}]   ;;  %s885_s0 = inlined_call_operand.vmem [shape: f32[24,16], index: 0, kind: input, shape index: {}]   ;;  %s886_s6 = inlined_call_operand.vmem [shape: f32[2,32,32], index: 6, kind: input, shape index: {}]   ;;  %s887_s3 = inlined_call_operand.vmem [shape: f32[5,32], index: 3, kind: input, shape index: {}]   ;;  %s888_s8 = inlined_call_operand.vmem [shape: f32[2,32,32], index: 8, kind: input, shape index: {}]   ;;  %s889_s1 = inlined_call_operand.vmem [shape: f32[24,32], index: 1, kind: input, shape index: {}]   ;;  %s890_s4 = inlined_call_operand.vmem [shape: f32[16,24], index: 4, kind: input, shape index: {}]   ;;  %s891_s7 = inlined_call_operand.vmem [shape: f32[2,32,32], index: 7, kind: input, shape index: {}]   ;;  %s892_s5 = inlined_call_operand.vmem [shape: f32[8,16], index: 5, kind: input, shape index: {}]   ;;  %s893_s9 = inlined_call_operand.vmem [shape: s32[3,128], index: 9, kind: input, shape index: {}]   ;;  %s894_s10 = inlined_call_operand.vmem [shape: f32[2,128], index: 10, kind: input, shape index: {}]   ;;  %s895_s11 = inlined_call_operand.vmem [shape: f32[1,128], index: 11, kind: output, shape index: {}]  }
   0x1   :  { %v47_v0 = vld [vmem:[%s884_s2 + $0x8] sm:$0xff]  ;;  %v46_v1 = vld [vmem:[%s884_s2] sm:$0xff]  ;;  %v96_v3 = vld [vmem:[%s886_s6 + $0x18] sm:$0xff] }
   0x2   :  { %73 = vmatpush.msra.mxu0 %v47_v0  ;;  %v43_v2 = vld [vmem:[%s885_s0] sm:$0xff]  ;;  %618 = vmatpush.msra.mxu1 %v96_v3  ;;  %v44_v4 = vld [vmem:[%s885_s0 + $0x8] sm:$0xff]  ;;  %v45_v5 = vld [vmem:[%s885_s0 + $0x10] sm:$0xff] }
   0x3   :  { %v95_v6 = vld [vmem:[%s886_s6 + $0x10] sm:$0xff]  ;;  %v94_v7 = vld [vmem:[%s886_s6 + $0x8] sm:$0xff]  ;;  %v93_v8 = vld [vmem:[%s886_s6] sm:$0xff] }
   0x4   :  { %74 = vmatpush.msra.mxu0 %v46_v1  ;;  %619 = vmatpush.msra.mxu1 %v95_v6  ;;  %v186_v9 = vld [vmem:[%s888_s8 + $0x18] sm:$0xff]  ;;  %v185_v10 = vld [vmem:[%s888_s8 + $0x10] sm:$0xff]  ;;  %v184_v11 = vld [vmem:[%s888_s8 + $0x8] sm:$0xff] }
   0x5   :  { %571 = vmatmul.msk.f32.vlgmr.msra.gmra.mxu0 %vm49_vm0, %v43_v2  ;;  %625 = vmatpush.msra.mxu3 %v186_v9  ;;  %v183_v12 = vld [vmem:[%s888_s8] sm:$0xff]  ;;  %v86_v19 = vld [vmem:[%s889_s1 + $0x8] sm:$0xff]  ;;  %v87_v23 = vld [vmem:[%s889_s1 + $0x10] sm:$0xff] }
   0x6   :  { %120 = vmatpush.msrb.mxu0 %v96_v3  ;;  %620 = vmatpush.msra.mxu1 %v94_v7  ;;  %v631_v13 = vld [vmem:[%s887_s3] ss:$0 sm:$0xff]  ;;  %v92_v28 = vld [vmem:[%s890_s4 + $0x8] sm:$0xff]  ;;  %v632_v32 = vld [vmem:[%s887_s3 + $0x1] ss:$0 sm:$0xff] }
   0x7   :  { %626 = vmatpush.msra.mxu3 %v185_v10  ;;  %v85_v15 = vld [vmem:[%s889_s1] sm:$0xff]  ;;  %v170_v29 = vsel %vm137_vm2, %v92_v28, 0.0  ;;  %v182_v40 = vld [vmem:[%s891_s7 + $0x18] sm:$0xff]  ;;  %v181_v41 = vld [vmem:[%s891_s7 + $0x10] sm:$0xff] }
   0x8   :  { %121 = vmatpush.msrb.mxu0 %v95_v6  ;;  %621 = vmatpush.msra.mxu1 %v93_v8  ;;  %v91_v26 = vld [vmem:[%s890_s4] sm:$0xff]  ;;  %v180_v42 = vld [vmem:[%s891_s7 + $0x8] sm:$0xff]  ;;  %v586_v54 = vld [vmem:[%s886_s6 + $0x38] sm:$0xff] }
   0x9   :  { %627 = vmatpush.msra.mxu3 %v184_v11  ;;  %v167_v27 = vsel %vm137_vm2, %v91_v26, 0.0  ;;  %v179_v43 = vld [vmem:[%s891_s7] sm:$0xff]  ;;  %v597_v55 = vld [vmem:[%s888_s8 + $0x38] sm:$0xff]  ;;  %v585_v56 = vld [vmem:[%s886_s6 + $0x30] sm:$0xff] }
   0xa   :  { %122 = vmatpush.msrb.mxu0 %v94_v7  ;;  %199 = vmatpush.msrb.mxu1 %v186_v9  ;;  %v596_v57 = vld [vmem:[%s888_s8 + $0x30] sm:$0xff]  ;;  %v584_v58 = vld [vmem:[%s886_s6 + $0x28] sm:$0xff]  ;;  %v583_v60 = vld [vmem:[%s886_s6 + $0x20] sm:$0xff] }
   0xb   :  { %628 = vmatpush.msra.mxu3 %v183_v12  ;;  %168 = vadd.xlane.f32.xlu0 %v167_v27  ;;  %v595_v59 = vld [vmem:[%s888_s8 + $0x28] sm:$0xff]  ;;  %v594_v61 = vld [vmem:[%s888_s8 + $0x20] sm:$0xff] }
   0xc   :  { %123 = vmatpush.msrb.mxu0 %v93_v8  ;;  %200 = vmatpush.msrb.mxu1 %v185_v10  ;;  %v633_v62 = vld [vmem:[%s887_s3 + $0x2] ss:$0 sm:$0xff] }
   0xd   :  { %572 = vmatmul.msk.f32.gmra.mxu0 %vm49_vm0, %v44_v4  ;;  %269 = vmatpush.msrb.mxu3 %v586_v54  ;;  %v244_v9 = vld [vmem:[%s892_s5] sm:$0xff] }
   0xe   :  { %201 = vmatpush.msrb.mxu1 %v184_v11  ;;  %v305_v10 = vsel %vm49_vm0, %v244_v9, 0.0 }
   0xf   :  { %270 = vmatpush.msrb.mxu3 %v585_v56  ;;  %306 = vadd.xlane.f32.xlu1 %v305_v10 }
  0x10   :  { %202 = vmatpush.msrb.mxu1 %v183_v12  ;;  %v634_v12 = vld [vmem:[%s887_s3 + $0x3] ss:$0 sm:$0xff] }
  0x11   :  { %271 = vmatpush.msrb.mxu3 %v584_v58 }
  0x13   :  { %171 = vadd.xlane.f32.xlu0 %v170_v29  ;;  %272 = vmatpush.msrb.mxu3 %v583_v60 }
  0x15   :  { %573 = vmatmul.msk.f32.gmra.mxu0 %vm49_vm0, %v45_v5 }
  0x7e   :  { %v169_v44 = vpop.xlane.xlu0 %168 }
  0x7f   :  { %v173_v45 = vmax.f32 %v169_v44, 1.0 }
  0x81   :  { %639 = vrcp.f32 %v173_v45 }
  0x82   :  { %v76_v14 = vpop.f32.mrf.mxu0 }
  0x83   :  { %v77_v16 = vadd.f32 %v631_v13, %v76_v14 }
  0x85   :  { %v756_v17 = vadd.f32 %v85_v15, %v77_v16 }
  0x86   :  { %v172_v46 = vpop.xlane.xlu0 %171 }
  0x87   :  { %574 = vmatmul.msk.f32.vlgmr.msrb.gmra.mxu0 %vm98_vm1, %v756_v17  ;;  %v174_v47 = vmax.f32 %v172_v46, 1.0  ;;  %v640_v48 = vpop.eup %639 }
  0x89   :  { %641 = vrcp.f32 %v174_v47 }
  0x8a   :  { %v79_v18 = vpop.f32.mrf.mxu0 }
  0x8b   :  { %v80_v20 = vadd.f32 %v631_v13, %v79_v18 }
  0x8d   :  { %v89_v21 = vadd.f32 %v86_v19, %v80_v20  ;;  %v593_v19 = vld [vmem:[%s891_s7 + $0x38] sm:$0xff]  ;;  %v592_v20 = vld [vmem:[%s891_s7 + $0x30] sm:$0xff] }
  0x8f   :  { %575 = vmatmul.msk.f32.gmra.mxu0 %vm98_vm1, %v89_v21  ;;  %580 = vmatmul.msk.f32.vlgmr.msra.gmra.mxu3 %vm98_vm1, %v89_v21  ;;  %v642_v51 = vpop.eup %641  ;;  %v591_v21 = vld [vmem:[%s891_s7 + $0x28] sm:$0xff] }
  0x92   :  { %v82_v22 = vpop.f32.mrf.mxu0 }
  0x93   :  { %v83_v24 = vadd.f32 %v631_v13, %v82_v22  ;;  %v590_v22 = vld [vmem:[%s891_s7 + $0x20] sm:$0xff] }
  0x95   :  { %v90_v25 = vadd.f32 %v87_v23, %v83_v24  ;;  %v307_v23 = vpop.xlane.xlu1 %306 }
  0x96   :  { %v308_v24 = vmax.f32 %v307_v23, 1.0 }
  0x97   :  { %576 = vmatmul.msk.f32.vlgmr.msra.gmra.mxu1 %vm98_vm1, %v90_v25 }
  0x98   :  { %333 = vmatpush.msra.mxu1 %v597_v55  ;;  %643 = vrcp.f32 %v308_v24 }
  0x9a   :  { %334 = vmatpush.msra.mxu1 %v596_v57 }
  0x9c   :  { %335 = vmatpush.msra.mxu1 %v595_v59 }
  0x9e   :  { %336 = vmatpush.msra.mxu1 %v594_v61  ;;  %v644_v25 = vpop.eup %643 }
  0x9f   :  { %579 = vmatmul.msk.f32.vlgmr.msrb.gmra.mxu1 %vm98_vm1, %v756_v17 }
 0x104   :  { %v125_v30 = vpop.f32.mrf.mxu0 }
 0x105   :  { %v126_v36 = vadd.f32 %v632_v32, %v125_v30 }
 0x107   :  { %v134_v39 = vmax.f32 %v126_v36, 0.0 }
 0x10c   :  { %v128_v31 = vpop.f32.mrf.mxu0 }
 0x10d   :  { %v129_v34 = vadd.f32 %v632_v32, %v128_v31 }
 0x10f   :  { %v135_v38 = vmax.f32 %v129_v34, 0.0 }
 0x112   :  { %v207_v4 = vpop.f32.mrf.mxu3 }
 0x114   :  { %v131_v33 = vpop.f32.mrf.mxu1 }
 0x115   :  { %v132_v35 = vadd.f32 %v632_v32, %v131_v33 }
 0x117   :  { %v136_v37 = vmax.f32 %v132_v35, 0.0 }
 0x119   :  { %157 = vmatpush.msra.mxu0 %v136_v37  ;;  %622 = vmatpush.msra.mxu2 %v136_v37  ;;  %v384_v37 = vlaneseq }
 0x11b   :  { %158 = vmatpush.msra.mxu0 %v135_v38  ;;  %623 = vmatpush.msra.mxu2 %v135_v38  ;;  %v636_v38 = vld [vmem:[%s893_s9] ss:$0 sm:$0xff] }
 0x11c   :  { %v204_v63 = vpop.f32.mrf.mxu1 }
 0x11d   :  { %159 = vmatpush.msra.mxu0 %v134_v39  ;;  %624 = vmatpush.msra.mxu2 %v134_v39  ;;  %v637_v39 = vld [vmem:[%s893_s9 + $0x2] ss:$0 sm:$0xff] }
 0x11e   :  { %577 = vmatmul.msk.f32.vlgmr.msra.gmra.mxu0 %vm137_vm2, %v91_v26  ;;  %578 = vmatmul.msk.f32.vlgmr.msra.gmra.mxu2 %vm137_vm2, %v92_v28  ;;  %v635_v28 = vld [vmem:[%s887_s3 + $0x4] ss:$0 sm:$0xff] }
 0x11f   :  { %228 = vmatpush.msrb.mxu2 %v182_v40  ;;  %v385_v40 = vshrl.u32 %v384_v37, 7 }
 0x121   :  { %229 = vmatpush.msrb.mxu2 %v181_v41  ;;  %vm388_vm3 = vcmp.eq.s32.totalorder %v385_v40, %v636_v38  ;;  %vm501_vm4 = vcmp.eq.s32.totalorder %v385_v40, %v637_v39  ;;  %v647_v41 = vmov 1.0  }
 0x122   :  { %613 = vmatpush.msk.msra.mxu3 %vm501_vm4, %v647_v41 }
 0x123   :  { %230 = vmatpush.msrb.mxu2 %v180_v42 }
 0x125   :  { %231 = vmatpush.msrb.mxu2 %v179_v43 }
 0x127   :  { %601 = vmatpush.msk.msra.mxu2 %vm388_vm3, %v647_v41 }
 0x19b   :  { %v161_v49 = vpop.f32.mrf.mxu0 }
 0x19c   :  { %v177_v50 = vmul.f32 %v640_v48, %v161_v49 }
 0x19e   :  { %581 = vmatmul.msk.f32.vlgmr.msrb.gmra.mxu2 %vm98_vm1, %v177_v50 }
 0x1a1   :  { %v164_v52 = vpop.f32.mrf.mxu2 }
 0x1a2   :  { %v178_v53 = vmul.f32 %v642_v51, %v164_v52  ;;  %v638_v51 = vld [vmem:[%s893_s9 + $0x1] ss:$0 sm:$0xff] }
 0x1a3   :  { %vm467_vm8 = vcmp.eq.s32.totalorder %v385_v40, %v638_v51 }
 0x1a4   :  { %607 = vmatpush.msk.msrb.mxu1 %vm467_vm8, %v647_v41 }
 0x1a6   :  { %582 = vmatmul.msk.f32.gmra.mxu2 %vm98_vm1, %v178_v53 }
 0x221   :  { %v233_v0 = vpop.f32.mrf.mxu2 }
 0x222   :  { %v234_v1 = vadd.f32 %v233_v0, %v204_v63 }
 0x224   :  { %v240_v2 = vadd.f32 %v633_v62, %v234_v1 }
 0x226   :  { %v242_v3 = vmax.f32 %v240_v2, 0.0 }
 0x228   :  { %587 = vmatmul.msk.f32.vlgmr.msrb.gmra.mxu3 %vm98_vm1, %v242_v3  ;;  %598 = vmatmul.msk.f32.vlgmr.msra.gmra.mxu1 %vm98_vm1, %v242_v3 }
 0x229   :  { %v236_v5 = vpop.f32.mrf.mxu2 }
 0x22a   :  { %v237_v6 = vadd.f32 %v236_v5, %v207_v4 }
 0x22c   :  { %v241_v7 = vadd.f32 %v633_v62, %v237_v6 }
 0x22e   :  { %v243_v8 = vmax.f32 %v241_v7, 0.0 }
 0x230   :  { %588 = vmatmul.msk.f32.gmra.mxu3 %vm98_vm1, %v243_v8 }
 0x2a5   :  { %v338_v29 = vpop.f32.mrf.mxu1 }
 0x2ab   :  { %v274_v11 = vpop.f32.mrf.mxu3 }
 0x2ac   :  { %v275_v14 = vadd.f32 %v634_v12, %v274_v11 }
 0x2ae   :  { %v280_v18 = vmax.f32 %v275_v14, 0.0 }
 0x2b3   :  { %v277_v13 = vpop.f32.mrf.mxu3 }
 0x2b4   :  { %v278_v15 = vadd.f32 %v634_v12, %v277_v13 }
 0x2b6   :  { %v281_v16 = vmax.f32 %v278_v15, 0.0 }
 0x2b8   :  { %299 = vmatpush.msrb.mxu0 %v281_v16 }
 0x2ba   :  { %300 = vmatpush.msrb.mxu0 %v280_v18 }
 0x2bb   :  { %589 = vmatmul.msk.f32.vlgmr.msrb.gmra.mxu0 %vm49_vm0, %v244_v9 }
 0x2bc   :  { %356 = vmatpush.msra.mxu0 %v593_v19 }
 0x2be   :  { %357 = vmatpush.msra.mxu0 %v592_v20 }
 0x2c0   :  { %358 = vmatpush.msra.mxu0 %v591_v21 }
 0x2c2   :  { %359 = vmatpush.msra.mxu0 %v590_v22 }
 0x338   :  { %v302_v26 = vpop.f32.mrf.mxu0 }
 0x339   :  { %v310_v27 = vmul.f32 %v644_v25, %v302_v26 }
 0x33b   :  { %599 = vmatmul.msk.f32.vlgmr.msra.gmra.mxu0 %vm98_vm1, %v310_v27 }
 0x3b8   :  { %v361_v30 = vpop.f32.mrf.mxu0 }
 0x3b9   :  { %v362_v31 = vadd.f32 %v361_v30, %v338_v29  ;;  %v546_v29 = vld [vmem:[%s894_s10] sm:$0x1]  ;;  %v561_v30 = vld [vmem:[%s894_s10 + $0x1] sm:$0x1] }
 0x3bb   :  { %v365_v32 = vadd.f32 %v635_v28, %v362_v31 }
 0x3bd   :  { %v366_v33 = vmax.f32 %v365_v32, 0.0 }
 0x3bf   :  { %v367_v34 = vadd.f32 %v366_v33, %v756_v17 }
 0x3c1   :  { %v368_v35 = vmul.f32 %v367_v34, %v367_v34 }
 0x3c3   :  { %v369_v36 = vsel %vm98_vm1, %v368_v35, 0.0 }
 0x3c4   :  { %370 = vadd.xlane.f32.xlu1 %v369_v36 }
 0x437   :  { %v371_v17 = vpop.xlane.xlu1 %370 }
 0x438   :  { %v372_v42 = vmax.f32 %v371_v17, 1e-12 }
 0x43a   :  { %645 = vrsqrt.f32 %v372_v42  ;;  %vm379_vm6 = vweird.f32 %v372_v42 }
 0x440   :  { %v646_v43 = vpop.eup %645 }
 0x441   :  { %v374_v44 = vmul.f32 %v646_v43, %v372_v42  ;;  %vm380_vm5 = vweird.f32 %v646_v43 }
 0x442   :  { %vm381_vm7 = vmor %vm379_vm6, %vm380_vm5 }
 0x443   :  { %v375_v45 = vmul.f32 %v646_v43, %v374_v44 }
 0x445   :  { %v376_v46 = vmul.f32 0.5, %v375_v45 }
 0x447   :  { %v377_v47 = vsub.f32 1.5, %v376_v46 }
 0x449   :  { %v378_v48 = vmul.f32 %v646_v43, %v377_v47 }
 0x44b   :  { %v382_v49 = vsel %vm381_vm7, %v646_v43, %v378_v48 }
 0x44c   :  { %v383_v50 = vmul.f32 %v382_v49, %v367_v34 }
 0x44e   :  { %391 = vxpose.xlu2.b32.start.end [1/1] (short) (narrow) %v383_v50, 32 }
 0x4e7   :  { %v407_v52 = vpop.trf.xlu2 }
 0x4e8   :  { %602 = vmatmul.msk.f32.vlgmr.msra.gmra.mxu2 %vm423_vm9, %v407_v52  ;;  %614 = vmatmul.msk.f32.vlgmr.msra.gmra.mxu3 %vm423_vm9, %v407_v52 }
 0x4e9   :  { %608 = vmatmul.msk.f32.vlgmr.msrb.gmra.mxu1 %vm423_vm9, %v407_v52 }
 0x4ef   :  { %v408_v53 = vpop.trf.xlu2 }
 0x4f0   :  { %603 = vmatmul.msk.f32.gmra.mxu2 %vm423_vm9, %v408_v53  ;;  %615 = vmatmul.msk.f32.gmra.mxu3 %vm423_vm9, %v408_v53 }
 0x4f1   :  { %609 = vmatmul.msk.f32.gmra.mxu1 %vm423_vm9, %v408_v53 }
 0x4f7   :  { %v409_v54 = vpop.trf.xlu2 }
 0x4f8   :  { %604 = vmatmul.msk.f32.gmra.mxu2 %vm423_vm9, %v409_v54  ;;  %616 = vmatmul.msk.f32.gmra.mxu3 %vm423_vm9, %v409_v54 }
 0x4f9   :  { %610 = vmatmul.msk.f32.gmra.mxu1 %vm423_vm9, %v409_v54 }
 0x4ff   :  { %v410_v55 = vpop.trf.xlu2 }
 0x500   :  { %605 = vmatmul.msk.f32.gmra.mxu2 %vm423_vm9, %v410_v55  ;;  %617 = vmatmul.msk.f32.gmra.mxu3 %vm423_vm9, %v410_v55 }
 0x501   :  { %611 = vmatmul.msk.f32.gmra.mxu1 %vm423_vm9, %v410_v55 }
 0x566   :  { %v487_v56 = vpop.f32.mrf.mxu1 }
 0x56b   :  { %v453_v57 = vpop.f32.mrf.mxu2  ;;  %v521_v58 = vpop.f32.mrf.mxu3 }
 0x56c   :  { %v533_v3 = vmul.f32 %v487_v56, %v453_v57  ;;  %v548_v4 = vmul.f32 %v521_v58, %v453_v57 }
 0x56e   :  { %v490_v59 = vpop.f32.mrf.mxu1 }
 0x573   :  { %v456_v60 = vpop.f32.mrf.mxu2  ;;  %v524_v61 = vpop.f32.mrf.mxu3 }
 0x574   :  { %v534_v1 = vmul.f32 %v490_v59, %v456_v60  ;;  %v549_v2 = vmul.f32 %v524_v61, %v456_v60 }
 0x576   :  { %v493_v62 = vpop.f32.mrf.mxu1  ;;  %v537_v7 = vadd.f32 %v534_v1, %v533_v3  ;;  %v552_v8 = vadd.f32 %v549_v2, %v548_v4 }
 0x57b   :  { %v459_v63 = vpop.f32.mrf.mxu2  ;;  %v527_v0 = vpop.f32.mrf.mxu3 }
 0x57c   :  { %v535_v5 = vmul.f32 %v493_v62, %v459_v63  ;;  %v550_v6 = vmul.f32 %v527_v0, %v459_v63 }
 0x57e   :  { %v496_v9 = vpop.f32.mrf.mxu1  ;;  %v538_v12 = vadd.f32 %v537_v7, %v535_v5  ;;  %v553_v13 = vadd.f32 %v552_v8, %v550_v6 }
 0x583   :  { %v462_v10 = vpop.f32.mrf.mxu2  ;;  %v530_v11 = vpop.f32.mrf.mxu3 }
 0x584   :  { %v536_v14 = vmul.f32 %v496_v9, %v462_v10  ;;  %v551_v15 = vmul.f32 %v530_v11, %v462_v10 }
 0x586   :  { %v539_v16 = vadd.f32 %v538_v12, %v536_v14  ;;  %v554_v18 = vadd.f32 %v553_v13, %v551_v15 }
 0x588   :  { %v540_v19 = vrot.slane %v539_v16, 4  ;;  %v555_v20 = vrot.slane %v554_v18, 4 }
 0x58a   :  { %v541_v21 = vadd.f32 %v540_v19, %v539_v16  ;;  %v556_v22 = vadd.f32 %v555_v20, %v554_v18 }
 0x58c   :  { %v542_v23 = vrot.slane %v541_v21, 2  ;;  %v557_v24 = vrot.slane %v556_v22, 2 }
 0x58e   :  { %v543_v25 = vadd.f32 %v542_v23, %v541_v21  ;;  %v558_v26 = vadd.f32 %v557_v24, %v556_v22 }
 0x590   :  { %v544_v27 = vrot.slane %v543_v25, 1  ;;  %v559_v28 = vrot.slane %v558_v26, 1 }
 0x592   :  { %v545_v31 = vadd.f32 %v544_v27, %v543_v25  ;;  %v560_v32 = vadd.f32 %v559_v28, %v558_v26 }
 0x594   :  { %v547_v33 = vadd.f32 %v546_v29, %v545_v31  ;;  %v562_v34 = vadd.f32 %v561_v30, %v560_v32 }
 0x596   :  { %v563_v35 = vsub.f32 %v562_v34, %v547_v33 }
 0x598   :  { %v564_v36 = vadd.f32 1.0, %v563_v35 }
 0x59a   :  { %v565_v37 = vmax.f32 %v564_v36, 0.0 }
 0x59c   :  { %566 = vst [vmem:[%s895_s11] sm:$0x1] %v565_v37 }

</bundles_post_ra>
